<compile_context>
chip_gen: v7x
topology: tpu7x:2x2x1
jax: 0.10.0
libtpu: 0.0.40
codegen_flags: <defaults>
</compile_context>

<pallas_src>
import functools

import jax
import jax.numpy as jnp
from jax.experimental import pallas as pl
from jax.experimental.pallas import tpu as pltpu


def _cdiv(a: int, b: int) -> int:
    return -(-a // b)


def _round_up(a: int, b: int) -> int:
    return _cdiv(a, b) * b


# ---------------------------------------------------------------------------
# Grid-less kernel: whole parameter in one VMEM block (small / default N).
# ---------------------------------------------------------------------------
def _sq_mean_single_kernel(x_ref, o_ref, *, total_n: int):
    # x_ref : (rows, 128) f32 VMEM block holding the whole (padded) parameter
    # o_ref : (1, 1) f32 SMEM scalar output (mean of squares)
    x = x_ref[...]
    o_ref[0, 0] = jnp.sum(x * x) / jnp.float32(total_n)


# ---------------------------------------------------------------------------
# Tiled streaming kernel: grid = (num_splits, steps_per_split).
# Square fused with accumulate via sub-chunked unrolled loop; one cross-lane
# (XLU) reduction per split at the very end.
# ---------------------------------------------------------------------------
def _sq_mean_tiled_kernel(x_ref, o_ref, acc_ref, *, chunk_rows: int):
    # x_ref  : (tile_rows, 128) f32 VMEM tile
    # o_ref  : (1, 1) f32 SMEM partial-sum output for this split
    # acc_ref: (32, 128) f32 VMEM accumulator (4 vregs)
    step = pl.program_id(1)

    @pl.when(step == 0)
    def _():
        acc_ref[...] = jnp.zeros_like(acc_ref)

    tile_rows = x_ref.shape[0]
    n_chunks = tile_rows // chunk_rows

    def body(j, carry):
        i0 = pl.multiple_of(j * chunk_rows, chunk_rows)
        c = x_ref[pl.ds(i0, chunk_rows), :]
        # Fused square + fold into a (32,128) partial; pure VPU work that hides
        # under the HBM DMA of the next tile.
        return carry + (c * c).reshape(chunk_rows // 32, 32, 128).sum(axis=0)

    part = jax.lax.fori_loop(
        0, n_chunks, body, jnp.zeros((32, 128), jnp.float32), unroll=True
    )
    acc_ref[...] += part

    @pl.when(step == pl.num_programs(1) - 1)
    def _():
        # Single cross-lane reduction per split.
        o_ref[0, 0] = jnp.sum(acc_ref[...])


def sparse_param_square_mean(
    param: jax.Array,
    *,
    tile_rows: int = 8192,          # 4 MiB / buffer: amortizes ~0.35 us step overhead
    num_splits: int = 2,            # lets v7x shard across its 2 TCs; harmless on 1-TC chips
    single_block_rows: int = 4096,  # <= 2 MiB -> grid-less single-block path
) -> jax.Array:
    """Compute mean(param**2) for a 1-D parameter via Pallas reduction kernels."""
    n = int(param.size)
    x = param.reshape(-1).astype(jnp.float32)

    # Pad to a whole number of (8, 128)-aligned rows; zeros don't affect the sum.
    rows = _round_up(_cdiv(n, 128), 8)
    n_pad = rows * 128
    if n_pad != n:
        x = jnp.pad(x, (0, n_pad - n))
    x2d = x.reshape(rows, 128)

    # ------------------------------------------------------------------ small
    if rows <= single_block_rows:
        out = pl.pallas_call(
            functools.partial(_sq_mean_single_kernel, total_n=n),
            out_shape=jax.ShapeDtypeStruct((1, 1), jnp.float32),
            in_specs=[pl.BlockSpec(memory_space=pltpu.MemorySpace.VMEM)],
            out_specs=pl.BlockSpec(memory_space=pltpu.MemorySpace.SMEM),
        )(x2d)
        return out[0, 0]

    # ------------------------------------------------------------------ tiled
    # Choose a tile that (a) keeps double-buffered VMEM small, (b) divides the
    # padded row count evenly, (c) is chunk-aligned.  Never shrink toward tiny
    # tiles for awkward sizes — pad with zeros instead.
    tile_rows = max(32, tile_rows)
    total_steps = _round_up(_cdiv(rows, tile_rows), num_splits)
    tr0 = _cdiv(rows, total_steps)
    align = 512 if tr0 >= 512 else 32
    tr = _round_up(tr0, align)
    chunk_rows = 512 if tr % 512 == 0 else tr
    steps_per_split = total_steps // num_splits
    rows_padded = total_steps * tr
    if rows_padded != rows:
        x2d = jnp.pad(x2d, ((0, rows_padded - rows), (0, 0)))

    out = pl.pallas_call(
        functools.partial(_sq_mean_tiled_kernel, chunk_rows=chunk_rows),
        out_shape=jax.ShapeDtypeStruct((num_splits, 1), jnp.float32),
        grid_spec=pltpu.PrefetchScalarGridSpec(
            num_scalar_prefetch=0,
            grid=(num_splits, steps_per_split),
            in_specs=[
                pl.BlockSpec(
                    (tr, 128), lambda c, s: (c * steps_per_split + s, 0)
                )
            ],
            out_specs=pl.BlockSpec(
                (1, 1), lambda c, s: (c, 0), memory_space=pltpu.MemorySpace.SMEM
            ),
            scratch_shapes=[pltpu.VMEM((32, 128), jnp.float32)],
        ),
        compiler_params=pltpu.CompilerParams(
            dimension_semantics=("parallel", "arbitrary"),
        ),
    )(x2d)
    return jnp.sum(out) / jnp.float32(n)


def make_sparse_param(key, size: int = 2 ** 16, sparsity: float = 2 ** (-6)) -> jax.Array:
    """Deterministic re-creation of the module's __init__ parameter."""
    k_val, k_mask = jax.random.split(key)
    param = jax.random.normal(k_val, (size,), dtype=jnp.float32)
    mask = (jax.random.uniform(k_mask, (size,)) < sparsity).astype(jnp.float32)
    # TODO(synk): PyTorch redraws the whole mask until nonzero; here we force one
    # surviving element in the (astronomically unlikely) all-zero case instead.
    mask = jnp.where(mask.sum() < 1, mask.at[0].set(1.0), mask)
    return param * mask


if __name__ == "__main__":
    # 1) Module default (size=2**16, sparsity=2**-6) -> grid-less single-block path.
    param = make_sparse_param(jax.random.PRNGKey(0), size=2 ** 16, sparsity=2 ** (-6))
    result = jax.block_until_ready(sparse_param_square_mean(param))
    ref = jnp.mean(param * param)
    assert jnp.allclose(result, ref, rtol=1e-5, atol=1e-7), (result, ref)

    # 2) Ragged larger input (not a multiple of 128) -> tiled path with zero
    #    padding, 2-way split, multiple pipelined steps per split.
    big = jax.random.normal(jax.random.PRNGKey(1), (2 ** 20 + 1000,), jnp.float32)
    result_big = jax.block_until_ready(sparse_param_square_mean(big, tile_rows=1024))
    ref_big = jnp.mean(big * big)
    assert jnp.allclose(result_big, ref_big, rtol=1e-4, atol=1e-6), (result_big, ref_big)

    # 3) Just above the single-block threshold with default tile size.
    med = jax.random.normal(jax.random.PRNGKey(2), (4224 * 128,), jnp.float32)
    result_med = jax.block_until_ready(sparse_param_square_mean(med))
    ref_med = jnp.mean(med * med)
    assert jnp.allclose(result_med, ref_med, rtol=1e-4, atol=1e-6), (result_med, ref_med)

    print("KERNEL_OK")
</pallas_src>

<mosaic_0001>
module attributes {stable_mosaic.version = 11 : i64} {
  func.func @_sq_mean_single_kernel(%arg0: memref<512x128xf32, #tpu.memory_space<vmem>>, %arg1: memref<1x1xf32, #tpu.memory_space<smem>>) attributes {dimension_semantics = [], scalar_prefetch = 0 : i64, scratch_operands = 0 : i64, tpu.core_type = #tpu.core_type<tc>} {
    %c0 = arith.constant 0 : index
    %c0_0 = arith.constant 0 : index
    %0 = vector.load %arg0[%c0, %c0_0] : memref<512x128xf32, #tpu.memory_space<vmem>>, vector<512x128xf32>
    %1 = arith.mulf %0, %0 : vector<512x128xf32>
    %2 = vector.shape_cast %1 : vector<512x128xf32> to vector<1x512x128xf32>
    %cst = arith.constant dense<0.000000e+00> : vector<1xf32>
    %3 = vector.multi_reduction <add>, %2, %cst [1, 2] : vector<1x512x128xf32> to vector<1xf32>
    %4 = vector.shape_cast %3 : vector<1xf32> to vector<1x1x1xf32>
    %5 = vector.extract %4[0, 0, 0] : f32 from vector<1x1x1xf32>
    %cst_1 = arith.constant 6.553600e+04 : f32
    %6 = arith.divf %5, %cst_1 : f32
    %c0_2 = arith.constant 0 : index
    %c0_3 = arith.constant 0 : index
    %7 = memref.load %arg1[%c0_2, %c0_3] : memref<1x1xf32, #tpu.memory_space<smem>>
    memref.store %6, %arg1[%c0_2, %c0_3] : memref<1x1xf32, #tpu.memory_space<smem>>
    return
  }
}

</mosaic_0001>

<bundles_post_ra>
// kernel: tpu_custom_call.1
= control target key start
LH: loop header
LB: loop body
LE: loop exit
PB: predicated region body
PF: predicated region fallthrough
CT: control target
= control target key end

     0   :  { %6 = vsyncpa [#allocation3], 0  ;;  %s322_s0 = inlined_call_operand.hbm [shape: f32[512,128], index: 0, kind: input, shape index: {}]   ;;  %s323_s1 = inlined_call_operand.hbm [shape: f32[1,1], index: 1, kind: output, shape index: {}]  }
   0x1   :  { %7 = vsyncpa [#allocation4], 0  ;;  %s284_s6 = smov [#allocation2]   ;;  %s248_s10 = scalar_lea.hbm %s322_s0, 8192 }
   0x2   :  { %s13_s7 = sshll.u32 %s284_s6, 4  ;;  %p249_p0 = scmp.ne.s32.totalorder %s322_s0, %s248_s10  ;;  %s14_s7 = int_to_ptr.vmem [resolvable:$true] %s13_s7 }
   0x3   :  { %p252_p1 = scmp.lt.u32.totalorder %s248_s10, %s322_s0 }
   0x5   :  { %p254_p2 = pnand %p252_p1, %p249_p0 }
   0x7   :  { %257 = shalt.err (!%p254_p2)
}
   0x8   :  { %s258_s15 = scalar_lea.vmem %s14_s7, 8192  ;;  %p263_p4 = scmp.lt.s32.totalorder %s14_s7, %s14_s7 }
   0x9   :  { %p259_p3 = scmp.ne.s32.totalorder %s14_s7, %s258_s15  ;;  %p264_p5 = scmp.lt.s32.totalorder %s258_s15, %s258_s15 }
   0xb   :  { %p265_p6 = por %p264_p5, %p263_p4 }
   0xd   :  { %p266_p7 = pnand %p265_p6, %p259_p3 }
   0xf   :  { %269 = shalt.err (!%p266_p7)
}
  0x10   :  { %s285_s16 = smov 128   ;;  %s286_s17 = smov 8  }
  0x11   :  { %19 = dma.hbm_to_vmem [thread:$0]  %s322_s0, 8192, %s14_s7, [#allocation3], %s285_s16, %s285_s16, %s286_s17  }
  0x12   :  { %280 = dma.done.wait [#allocation3], 8192  }
  0x13   :  { %281 = vsyncadd [#allocation3], 4294959104  ;;  %v23_v0 = vld [vmem:[#allocation2] sm:$0xff]  ;;  %v24_v1 = vld [vmem:[#allocation2 + $0x8] sm:$0xff]  ;;  %s270_s23 = scalar_lea.hbm %s323_s1, 16 }
  0x14   :  { %v25_v2 = vld [vmem:[#allocation2 + $0x10] sm:$0xff]  ;;  %v26_v3 = vld [vmem:[#allocation2 + $0x18] sm:$0xff]  ;;  %v87_v4 = vmul.f32 %v23_v0, %v23_v0  ;;  %v88_v5 = vmul.f32 %v24_v1, %v24_v1  ;;  %v27_v7 = vld [vmem:[#allocation2 + $0x20] sm:$0xff]  ;;  %p271_p8 = scmp.ne.s32.totalorder %s323_s1, %s270_s23  ;;  %p274_p9 = scmp.lt.u32.totalorder %s270_s23, %s323_s1 }
  0x15   :  { %v89_v6 = vmul.f32 %v25_v2, %v25_v2  ;;  %v90_v8 = vmul.f32 %v26_v3, %v26_v3  ;;  %v28_v10 = vld [vmem:[#allocation2 + $0x28] sm:$0xff]  ;;  %v91_v11 = vmul.f32 %v27_v7, %v27_v7  ;;  %v29_v13 = vld [vmem:[#allocation2 + $0x30] sm:$0xff]  ;;  %v30_v16 = vld [vmem:[#allocation2 + $0x38] sm:$0xff] }
  0x16   :  { %v151_v9 = vadd.f32 %v88_v5, %v87_v4  ;;  %v92_v14 = vmul.f32 %v28_v10, %v28_v10  ;;  %v93_v17 = vmul.f32 %v29_v13, %v29_v13  ;;  %v31_v19 = vld [vmem:[#allocation2 + $0x40] sm:$0xff]  ;;  %v94_v20 = vmul.f32 %v30_v16, %v30_v16  ;;  %v32_v22 = vld [vmem:[#allocation2 + $0x48] sm:$0xff]  ;;  %v33_v25 = vld [vmem:[#allocation2 + $0x50] sm:$0xff]  ;;  %p276_p10 = pnand %p274_p9, %p271_p8 }
  0x17   :  { %v95_v23 = vmul.f32 %v31_v19, %v31_v19  ;;  %v96_v26 = vmul.f32 %v32_v22, %v32_v22  ;;  %v34_v28 = vld [vmem:[#allocation2 + $0x58] sm:$0xff]  ;;  %v97_v29 = vmul.f32 %v33_v25, %v33_v25  ;;  %v35_v31 = vld [vmem:[#allocation2 + $0x60] sm:$0xff]  ;;  %v36_v34 = vld [vmem:[#allocation2 + $0x68] sm:$0xff] }
  0x18   :  { %v152_v12 = vadd.f32 %v151_v9, %v89_v6  ;;  %v98_v32 = vmul.f32 %v34_v28, %v34_v28  ;;  %v99_v35 = vmul.f32 %v35_v31, %v35_v31  ;;  %v37_v37 = vld [vmem:[#allocation2 + $0x70] sm:$0xff]  ;;  %v100_v38 = vmul.f32 %v36_v34, %v36_v34  ;;  %v38_v40 = vld [vmem:[#allocation2 + $0x78] sm:$0xff]  ;;  %v39_v43 = vld [vmem:[#allocation2 + $0x80] sm:$0xff] }
  0x19   :  { %v101_v41 = vmul.f32 %v37_v37, %v37_v37  ;;  %v102_v44 = vmul.f32 %v38_v40, %v38_v40  ;;  %v40_v46 = vld [vmem:[#allocation2 + $0x88] sm:$0xff]  ;;  %v103_v47 = vmul.f32 %v39_v43, %v39_v43  ;;  %v41_v49 = vld [vmem:[#allocation2 + $0x90] sm:$0xff]  ;;  %v42_v52 = vld [vmem:[#allocation2 + $0x98] sm:$0xff] }
  0x1a   :  { %v153_v15 = vadd.f32 %v152_v12, %v90_v8  ;;  %v104_v50 = vmul.f32 %v40_v46, %v40_v46  ;;  %v105_v53 = vmul.f32 %v41_v49, %v41_v49  ;;  %v43_v55 = vld [vmem:[#allocation2 + $0xa0] sm:$0xff]  ;;  %v106_v56 = vmul.f32 %v42_v52, %v42_v52  ;;  %v44_v58 = vld [vmem:[#allocation2 + $0xa8] sm:$0xff]  ;;  %v45_v61 = vld [vmem:[#allocation2 + $0xb0] sm:$0xff] }
  0x1b   :  { %v107_v59 = vmul.f32 %v43_v55, %v43_v55  ;;  %v108_v62 = vmul.f32 %v44_v58, %v44_v58  ;;  %v46_v0 = vld [vmem:[#allocation2 + $0xb8] sm:$0xff]  ;;  %v109_v1 = vmul.f32 %v45_v61, %v45_v61  ;;  %v47_v3 = vld [vmem:[#allocation2 + $0xc0] sm:$0xff]  ;;  %v48_v6 = vld [vmem:[#allocation2 + $0xc8] sm:$0xff] }
  0x1c   :  { %v154_v18 = vadd.f32 %v153_v15, %v91_v11  ;;  %v110_v4 = vmul.f32 %v46_v0, %v46_v0  ;;  %v111_v7 = vmul.f32 %v47_v3, %v47_v3  ;;  %v49_v9 = vld [vmem:[#allocation2 + $0xd0] sm:$0xff]  ;;  %v112_v10 = vmul.f32 %v48_v6, %v48_v6  ;;  %v50_v12 = vld [vmem:[#allocation2 + $0xd8] sm:$0xff]  ;;  %v51_v15 = vld [vmem:[#allocation2 + $0xe0] sm:$0xff] }
  0x1d   :  { %v113_v13 = vmul.f32 %v49_v9, %v49_v9  ;;  %v114_v16 = vmul.f32 %v50_v12, %v50_v12  ;;  %v115_v19 = vmul.f32 %v51_v15, %v51_v15 }
  0x1e   :  { %v155_v21 = vadd.f32 %v154_v18, %v92_v14  ;;  %v52_v18 = vld [vmem:[#allocation2 + $0xe8] sm:$0xff] }
  0x1f   :  { %v116_v22 = vmul.f32 %v52_v18, %v52_v18 }
  0x20   :  { %v156_v24 = vadd.f32 %v155_v21, %v93_v17  ;;  %v53_v21 = vld [vmem:[#allocation2 + $0xf0] sm:$0xff] }
  0x21   :  { %v117_v25 = vmul.f32 %v53_v21, %v53_v21 }
  0x22   :  { %v157_v27 = vadd.f32 %v156_v24, %v94_v20  ;;  %v54_v24 = vld [vmem:[#allocation2 + $0xf8] sm:$0xff] }
  0x23   :  { %v118_v28 = vmul.f32 %v54_v24, %v54_v24 }
  0x24   :  { %v158_v30 = vadd.f32 %v157_v27, %v95_v23  ;;  %v55_v27 = vld [vmem:[#allocation2 + $0x100] sm:$0xff] }
  0x25   :  { %v119_v31 = vmul.f32 %v55_v27, %v55_v27 }
  0x26   :  { %v159_v33 = vadd.f32 %v158_v30, %v96_v26  ;;  %v56_v30 = vld [vmem:[#allocation2 + $0x108] sm:$0xff] }
  0x27   :  { %v120_v34 = vmul.f32 %v56_v30, %v56_v30 }
  0x28   :  { %v160_v36 = vadd.f32 %v159_v33, %v97_v29  ;;  %v57_v33 = vld [vmem:[#allocation2 + $0x110] sm:$0xff] }
  0x29   :  { %v121_v37 = vmul.f32 %v57_v33, %v57_v33 }
  0x2a   :  { %v161_v39 = vadd.f32 %v160_v36, %v98_v32  ;;  %v58_v36 = vld [vmem:[#allocation2 + $0x118] sm:$0xff] }
  0x2b   :  { %v122_v40 = vmul.f32 %v58_v36, %v58_v36 }
  0x2c   :  { %v162_v42 = vadd.f32 %v161_v39, %v99_v35  ;;  %v59_v39 = vld [vmem:[#allocation2 + $0x120] sm:$0xff] }
  0x2d   :  { %v123_v43 = vmul.f32 %v59_v39, %v59_v39 }
  0x2e   :  { %v163_v45 = vadd.f32 %v162_v42, %v100_v38  ;;  %v60_v42 = vld [vmem:[#allocation2 + $0x128] sm:$0xff] }
  0x2f   :  { %v124_v46 = vmul.f32 %v60_v42, %v60_v42 }
  0x30   :  { %v164_v48 = vadd.f32 %v163_v45, %v101_v41  ;;  %v61_v45 = vld [vmem:[#allocation2 + $0x130] sm:$0xff] }
  0x31   :  { %v125_v49 = vmul.f32 %v61_v45, %v61_v45 }
  0x32   :  { %v165_v51 = vadd.f32 %v164_v48, %v102_v44  ;;  %v62_v48 = vld [vmem:[#allocation2 + $0x138] sm:$0xff] }
  0x33   :  { %v126_v52 = vmul.f32 %v62_v48, %v62_v48 }
  0x34   :  { %v166_v54 = vadd.f32 %v165_v51, %v103_v47  ;;  %v63_v51 = vld [vmem:[#allocation2 + $0x140] sm:$0xff] }
  0x35   :  { %v127_v55 = vmul.f32 %v63_v51, %v63_v51 }
  0x36   :  { %v167_v57 = vadd.f32 %v166_v54, %v104_v50  ;;  %v64_v54 = vld [vmem:[#allocation2 + $0x148] sm:$0xff] }
  0x37   :  { %v128_v58 = vmul.f32 %v64_v54, %v64_v54 }
  0x38   :  { %v168_v60 = vadd.f32 %v167_v57, %v105_v53  ;;  %v65_v57 = vld [vmem:[#allocation2 + $0x150] sm:$0xff] }
  0x39   :  { %v129_v61 = vmul.f32 %v65_v57, %v65_v57 }
  0x3a   :  { %v169_v63 = vadd.f32 %v168_v60, %v106_v56  ;;  %v66_v60 = vld [vmem:[#allocation2 + $0x158] sm:$0xff] }
  0x3b   :  { %v130_v0 = vmul.f32 %v66_v60, %v66_v60 }
  0x3c   :  { %v170_v2 = vadd.f32 %v169_v63, %v107_v59  ;;  %v67_v63 = vld [vmem:[#allocation2 + $0x160] sm:$0xff] }
  0x3d   :  { %v131_v3 = vmul.f32 %v67_v63, %v67_v63 }
  0x3e   :  { %v171_v5 = vadd.f32 %v170_v2, %v108_v62  ;;  %v68_v2 = vld [vmem:[#allocation2 + $0x168] sm:$0xff] }
  0x3f   :  { %v132_v6 = vmul.f32 %v68_v2, %v68_v2 }
  0x40   :  { %v172_v8 = vadd.f32 %v171_v5, %v109_v1  ;;  %v69_v5 = vld [vmem:[#allocation2 + $0x170] sm:$0xff] }
  0x41   :  { %v133_v9 = vmul.f32 %v69_v5, %v69_v5 }
  0x42   :  { %v173_v11 = vadd.f32 %v172_v8, %v110_v4  ;;  %v70_v8 = vld [vmem:[#allocation2 + $0x178] sm:$0xff] }
  0x43   :  { %v134_v12 = vmul.f32 %v70_v8, %v70_v8 }
  0x44   :  { %v174_v14 = vadd.f32 %v173_v11, %v111_v7  ;;  %v71_v11 = vld [vmem:[#allocation2 + $0x180] sm:$0xff] }
  0x45   :  { %v135_v15 = vmul.f32 %v71_v11, %v71_v11 }
  0x46   :  { %v175_v17 = vadd.f32 %v174_v14, %v112_v10  ;;  %v72_v14 = vld [vmem:[#allocation2 + $0x188] sm:$0xff] }
  0x47   :  { %v136_v18 = vmul.f32 %v72_v14, %v72_v14 }
  0x48   :  { %v176_v20 = vadd.f32 %v175_v17, %v113_v13  ;;  %v73_v17 = vld [vmem:[#allocation2 + $0x190] sm:$0xff] }
  0x49   :  { %v137_v21 = vmul.f32 %v73_v17, %v73_v17 }
  0x4a   :  { %v177_v23 = vadd.f32 %v176_v20, %v114_v16  ;;  %v74_v20 = vld [vmem:[#allocation2 + $0x198] sm:$0xff] }
  0x4b   :  { %v138_v24 = vmul.f32 %v74_v20, %v74_v20 }
  0x4c   :  { %v178_v26 = vadd.f32 %v177_v23, %v115_v19  ;;  %v75_v23 = vld [vmem:[#allocation2 + $0x1a0] sm:$0xff] }
  0x4d   :  { %v139_v27 = vmul.f32 %v75_v23, %v75_v23 }
  0x4e   :  { %v179_v29 = vadd.f32 %v178_v26, %v116_v22  ;;  %v76_v26 = vld [vmem:[#allocation2 + $0x1a8] sm:$0xff] }
  0x4f   :  { %v140_v30 = vmul.f32 %v76_v26, %v76_v26 }
  0x50   :  { %v180_v32 = vadd.f32 %v179_v29, %v117_v25  ;;  %v77_v29 = vld [vmem:[#allocation2 + $0x1b0] sm:$0xff] }
  0x51   :  { %v141_v33 = vmul.f32 %v77_v29, %v77_v29 }
  0x52   :  { %v181_v35 = vadd.f32 %v180_v32, %v118_v28  ;;  %v78_v32 = vld [vmem:[#allocation2 + $0x1b8] sm:$0xff] }
  0x53   :  { %v142_v36 = vmul.f32 %v78_v32, %v78_v32 }
  0x54   :  { %v182_v38 = vadd.f32 %v181_v35, %v119_v31  ;;  %v79_v35 = vld [vmem:[#allocation2 + $0x1c0] sm:$0xff] }
  0x55   :  { %v143_v39 = vmul.f32 %v79_v35, %v79_v35 }
  0x56   :  { %v183_v41 = vadd.f32 %v182_v38, %v120_v34  ;;  %v80_v38 = vld [vmem:[#allocation2 + $0x1c8] sm:$0xff] }
  0x57   :  { %v144_v42 = vmul.f32 %v80_v38, %v80_v38 }
  0x58   :  { %v184_v44 = vadd.f32 %v183_v41, %v121_v37  ;;  %v81_v41 = vld [vmem:[#allocation2 + $0x1d0] sm:$0xff] }
  0x59   :  { %v145_v45 = vmul.f32 %v81_v41, %v81_v41 }
  0x5a   :  { %v185_v47 = vadd.f32 %v184_v44, %v122_v40  ;;  %v82_v44 = vld [vmem:[#allocation2 + $0x1d8] sm:$0xff] }
  0x5b   :  { %v146_v48 = vmul.f32 %v82_v44, %v82_v44 }
  0x5c   :  { %v186_v50 = vadd.f32 %v185_v47, %v123_v43  ;;  %v83_v47 = vld [vmem:[#allocation2 + $0x1e0] sm:$0xff] }
  0x5d   :  { %v147_v51 = vmul.f32 %v83_v47, %v83_v47 }
  0x5e   :  { %v187_v53 = vadd.f32 %v186_v50, %v124_v46  ;;  %v84_v50 = vld [vmem:[#allocation2 + $0x1e8] sm:$0xff] }
  0x5f   :  { %v148_v54 = vmul.f32 %v84_v50, %v84_v50 }
  0x60   :  { %v188_v56 = vadd.f32 %v187_v53, %v125_v49  ;;  %v85_v53 = vld [vmem:[#allocation2 + $0x1f0] sm:$0xff] }
  0x61   :  { %v149_v57 = vmul.f32 %v85_v53, %v85_v53 }
  0x62   :  { %v189_v59 = vadd.f32 %v188_v56, %v126_v52  ;;  %v86_v56 = vld [vmem:[#allocation2 + $0x1f8] sm:$0xff] }
  0x64   :  { %v190_v62 = vadd.f32 %v189_v59, %v127_v55  ;;  %v150_v59 = vmul.f32 %v86_v56, %v86_v56 }
  0x66   :  { %v191_v1 = vadd.f32 %v190_v62, %v128_v58 }
  0x68   :  { %v192_v4 = vadd.f32 %v191_v1, %v129_v61 }
  0x6a   :  { %v193_v7 = vadd.f32 %v192_v4, %v130_v0 }
  0x6c   :  { %v194_v10 = vadd.f32 %v193_v7, %v131_v3 }
  0x6e   :  { %v195_v13 = vadd.f32 %v194_v10, %v132_v6 }
  0x70   :  { %v196_v16 = vadd.f32 %v195_v13, %v133_v9 }
  0x72   :  { %v197_v19 = vadd.f32 %v196_v16, %v134_v12 }
  0x74   :  { %v198_v22 = vadd.f32 %v197_v19, %v135_v15 }
  0x76   :  { %v199_v25 = vadd.f32 %v198_v22, %v136_v18 }
  0x78   :  { %v200_v28 = vadd.f32 %v199_v25, %v137_v21 }
  0x7a   :  { %v201_v31 = vadd.f32 %v200_v28, %v138_v24 }
  0x7c   :  { %v202_v34 = vadd.f32 %v201_v31, %v139_v27 }
  0x7e   :  { %v203_v37 = vadd.f32 %v202_v34, %v140_v30 }
  0x80   :  { %v204_v40 = vadd.f32 %v203_v37, %v141_v33 }
  0x82   :  { %v205_v43 = vadd.f32 %v204_v40, %v142_v36 }
  0x84   :  { %v206_v46 = vadd.f32 %v205_v43, %v143_v39 }
  0x86   :  { %v207_v49 = vadd.f32 %v206_v46, %v144_v42 }
  0x88   :  { %v208_v52 = vadd.f32 %v207_v49, %v145_v45 }
  0x8a   :  { %v209_v55 = vadd.f32 %v208_v52, %v146_v48 }
  0x8c   :  { %v210_v58 = vadd.f32 %v209_v55, %v147_v51 }
  0x8e   :  { %v211_v60 = vadd.f32 %v210_v58, %v148_v54 }
  0x90   :  { %v212_v61 = vadd.f32 %v211_v60, %v149_v57 }
  0x92   :  { %v213_v62 = vadd.f32 %v212_v61, %v150_v59 }
  0x94   :  { %214 = vadd.xlane.f32.xlu0 %v213_v62 }
 0x121   :  { %v215_v63 = vpop.xlane.xlu0 %214 }
 0x122   :  { %v216_v0 = vrot.slane %v215_v63, 4 }
 0x124   :  { %v217_v1 = vadd.f32 %v216_v0, %v215_v63 }
 0x126   :  { %v218_v2 = vrot.slane %v217_v1, 2 }
 0x128   :  { %v219_v3 = vadd.f32 %v218_v2, %v217_v1 }
 0x12a   :  { %v220_v4 = vrot.slane %v219_v3, 1 }
 0x12c   :  { %v221_v5 = vadd.f32 %v220_v4, %v219_v3 }
 0x12e   :  { %242 = vpush %v221_v5 }
 0x15f   :  { %s243_s0 = spop %242 }
 0x160   :  { %s225_s20 = smul.f32 1.5258789e-05, %s243_s0 }
 0x162   :  { %227 = sst [smem:[#allocation5]] %s225_s20 }
 0x163   :  { %279 = shalt.err (!%p276_p10)
}
 0x164   :  { %s287_s28 = smov [#allocation5]  }
 0x165   :  { %235 = dma.smem_to_hbm %s287_s28, 16, %s323_s1, [#allocation4]  }
 0x166   :  { %282 = dma.done.wait [#allocation4], 16  }
 0x167   :  { %283 = vsyncadd [#allocation4], 4294967280 }
 0x168   :  { %239 = sfence }
 0x169   :  { %240 = vsyncpa [#allocation3], 1 }
 0x16a   :  { %241 = vsyncpa [#allocation4], 1 }

</bundles_post_ra>
